<compile_context>
chip_gen: v5e
topology: v5e:2x2
jax: 0.10.0
libtpu: 0.0.40
codegen_flags: <defaults>
</compile_context>

<pallas_src>
import jax
import jax.numpy as jnp
from jax.experimental import pallas as pl
from jax.experimental.pallas import tpu as pltpu


# ---------------------------------------------------------------------------
# Kernels
# ---------------------------------------------------------------------------
def _mtl_kernel_nogn(x_ref, w_ref, loss_ref):
    # Packed input rows: 0 = losses, 1 = external weights, 2 = importances.
    losses = x_ref[0:1, :]
    w = x_ref[1:2, :] * x_ref[2:3, :]
    w_ref[...] = w
    # Weighted-sum compute_loss; scalar goes straight to SMEM.
    loss_ref[0, 0] = jnp.sum(w * losses)


def _mtl_kernel_gn(x_ref, w_ref, loss_ref):
    # Packed input rows: 0 = losses, 1 = external, 2 = importances, 3 = grad-norm w.
    losses = x_ref[0:1, :]
    w = x_ref[1:2, :] * x_ref[2:3, :] * x_ref[3:4, :]
    w_ref[...] = w
    loss_ref[0, 0] = jnp.sum(w * losses)


# ---------------------------------------------------------------------------
# Wrapper
# ---------------------------------------------------------------------------
def mtl_loss_pallas(losses_vec, external_weights, loss_importances,
                    gn_weights=None):
    """All inputs are 1-D float32 vectors of length D (= losses_dim).

    Returns (effective_weights[D], total_loss scalar).
    """
    d = losses_vec.shape[0]
    dp = ((d + 127) // 128) * 128          # lane-pad to a multiple of 128

    rows = [losses_vec, external_weights, loss_importances]
    if gn_weights is not None:
        rows.append(gn_weights)
    n = len(rows)

    # One packed, zero-padded slab -> a single HBM->VMEM DMA.
    packed = jnp.zeros((n, dp), jnp.float32)
    packed = packed.at[:, :d].set(
        jnp.stack([r.astype(jnp.float32) for r in rows], axis=0))

    kernel = _mtl_kernel_gn if gn_weights is not None else _mtl_kernel_nogn

    # NOTE: at D ~ O(10) the whole problem is one (partial) vreg, so grid=()
    # is correct.  If losses_dim ever grows to tens of thousands, switch to a
    # 1-D lane-axis grid with an SMEM/scratch accumulator (pl.when init /
    # finalize) and dimension_semantics=("parallel",) to use both v7x cores.
    w_out, loss_out = pl.pallas_call(
        kernel,
        out_shape=(
            jax.ShapeDtypeStruct((1, dp), jnp.float32),   # effective weights
            jax.ShapeDtypeStruct((1, 1), jnp.float32),    # aggregated loss
        ),
        grid=(),
        in_specs=[pl.BlockSpec((n, dp), lambda: (0, 0))],
        out_specs=(
            pl.BlockSpec((1, dp), lambda: (0, 0)),
            pl.BlockSpec(memory_space=pltpu.MemorySpace.SMEM),
        ),
    )(packed)

    return w_out[0, :d], loss_out[0, 0]


# ---------------------------------------------------------------------------
# Module port
# ---------------------------------------------------------------------------
class MTLLossJax:
    """JAX/Pallas port of MTLLoss.forward (weighted-sum compute_loss)."""

    def __init__(self, config, tasks):
        # tasks: dict name -> (loss_dim, importance)
        self.config = config
        self.tasks = tasks
        self.losses_dim = sum(ld for (ld, _) in tasks.values())
        # Expand importances per loss dimension, then normalize by the mean of
        # the expanded vector (matches the PyTorch reference).
        imp = jnp.concatenate([
            jnp.full((ld,), importance, dtype=jnp.float32)
            for (ld, importance) in tasks.values()
        ], axis=0)
        self.loss_importances = imp / jnp.mean(imp)
        self.grad_norm_do = bool(config.get('mtl_norm_do', False))

    def forward(self, losses, norm_layers, external_weights, split):
        # Gather + concat per-task losses in melt_tasks order (plain-JAX glue).
        parts = [jnp.atleast_1d(losses[name]).astype(jnp.float32)
                 for name in self.config['melt_tasks']]
        losses_vec = jnp.concatenate(parts, axis=0)

        # MTLGradNorm with empty history returns ones -> multiplying by it is a
        # no-op, so the grad-norm input is dropped from the kernel entirely.
        # TODO(synk): feed real grad-norm weights (via _mtl_kernel_gn) once the
        #             autograd-based norm history has a JAX counterpart.
        return mtl_loss_pallas(losses_vec,
                               external_weights.astype(jnp.float32),
                               self.loss_importances,
                               gn_weights=None)


# ---------------------------------------------------------------------------
# Self-test
# ---------------------------------------------------------------------------
if __name__ == "__main__":
    key = jax.random.PRNGKey(0)

    # Three tasks: (loss_dim, importance).  losses_dim = 2 + 3 + 3 = 8.
    tasks = {
        'seg': (2, 1.0),
        'det': (3, 2.0),
        'cls': (3, 0.5),
    }
    config = {
        'melt_tasks': ['seg', 'det', 'cls'],
        'mtl_norm_do': True,
        'mtl_norm_period': 10,
        'mtl_norm_length': 5,
    }

    mtl = MTLLossJax(config, tasks)

    k1, k2, k3, k4, k5 = jax.random.split(key, 5)
    losses = {
        'seg': jax.random.uniform(k1, (2,), dtype=jnp.float32),
        'det': jax.random.uniform(k2, (3,), dtype=jnp.float32),
        'cls': jax.random.uniform(k3, (3,), dtype=jnp.float32),
    }
    external_weights = jax.random.uniform(
        k4, (mtl.losses_dim,), dtype=jnp.float32) + 0.5

    # --- forward (no grad-norm history) ---
    eff_weights, total_loss = mtl.forward(
        losses, norm_layers=None, external_weights=external_weights,
        split='train')
    jax.block_until_ready((eff_weights, total_loss))

    losses_vec = jnp.concatenate(
        [jnp.atleast_1d(losses[n]) for n in config['melt_tasks']], axis=0)
    ref_w = external_weights * mtl.loss_importances
    ref_loss = jnp.sum(ref_w * losses_vec)
    assert jnp.allclose(eff_weights, ref_w, rtol=1e-6, atol=1e-6)
    assert jnp.allclose(total_loss, ref_loss, rtol=1e-6, atol=1e-6)

    # --- grad-norm-weight kernel variant (direct check) ---
    gn = jax.random.uniform(k5, (mtl.losses_dim,), dtype=jnp.float32) + 0.5
    eff_w_gn, loss_gn = mtl_loss_pallas(
        losses_vec, external_weights, mtl.loss_importances, gn_weights=gn)
    jax.block_until_ready((eff_w_gn, loss_gn))
    ref_w_gn = external_weights * mtl.loss_importances * gn
    ref_loss_gn = jnp.sum(ref_w_gn * losses_vec)
    assert jnp.allclose(eff_w_gn, ref_w_gn, rtol=1e-6, atol=1e-6)
    assert jnp.allclose(loss_gn, ref_loss_gn, rtol=1e-6, atol=1e-6)

    print("KERNEL_OK")
</pallas_src>

<mosaic_0001>
module attributes {stable_mosaic.version = 11 : i64} {
  func.func @_mtl_kernel_nogn(%arg0: memref<3x128xf32, #tpu.memory_space<vmem>>, %arg1: memref<1x128xf32, #tpu.memory_space<vmem>>, %arg2: memref<1x1xf32, #tpu.memory_space<smem>>) attributes {dimension_semantics = [], scalar_prefetch = 0 : i64, scratch_operands = 0 : i64, tpu.core_type = #tpu.core_type<tc>} {
    %c0 = arith.constant 0 : index
    %c0_0 = arith.constant 0 : index
    %0 = vector.load %arg0[%c0, %c0_0] : memref<3x128xf32, #tpu.memory_space<vmem>>, vector<1x128xf32>
    %c1 = arith.constant 1 : index
    %c0_1 = arith.constant 0 : index
    %1 = vector.load %arg0[%c1, %c0_1] : memref<3x128xf32, #tpu.memory_space<vmem>>, vector<1x128xf32>
    %c2 = arith.constant 2 : index
    %c0_2 = arith.constant 0 : index
    %2 = vector.load %arg0[%c2, %c0_2] : memref<3x128xf32, #tpu.memory_space<vmem>>, vector<1x128xf32>
    %3 = arith.mulf %1, %2 : vector<1x128xf32>
    %c0_3 = arith.constant 0 : index
    %c0_4 = arith.constant 0 : index
    %4 = vector.load %arg1[%c0_3, %c0_4] : memref<1x128xf32, #tpu.memory_space<vmem>>, vector<1x128xf32>
    tpu.vector_store %arg1[%c0_3, %c0_4], %3 {strides = array<i32>} : memref<1x128xf32, #tpu.memory_space<vmem>>, vector<1x128xf32>,
    %5 = arith.mulf %3, %0 : vector<1x128xf32>
    %6 = vector.shape_cast %5 : vector<1x128xf32> to vector<1x1x128xf32>
    %cst = arith.constant dense<0.000000e+00> : vector<1xf32>
    %7 = vector.multi_reduction <add>, %6, %cst [1, 2] : vector<1x1x128xf32> to vector<1xf32>
    %8 = vector.shape_cast %7 : vector<1xf32> to vector<1x1x1xf32>
    %9 = vector.extract %8[0, 0, 0] : f32 from vector<1x1x1xf32>
    %c0_5 = arith.constant 0 : index
    %c0_6 = arith.constant 0 : index
    %10 = memref.load %arg2[%c0_5, %c0_6] : memref<1x1xf32, #tpu.memory_space<smem>>
    memref.store %9, %arg2[%c0_5, %c0_6] : memref<1x1xf32, #tpu.memory_space<smem>>
    return
  }
}

</mosaic_0001>

<bundles_post_ra>
// kernel: tpu_custom_call.1
= control target key start
LH: loop header
LB: loop body
LE: loop exit
PB: predicated region body
PF: predicated region fallthrough
CT: control target
= control target key end

     0   :  { %8 = vsyncpa [#allocation3], 0  ;;  %s175_s0 = inlined_call_operand.hbm [shape: f32[3,128], index: 0, kind: input, shape index: {}]   ;;  %s176_s1 = inlined_call_operand.hbm [shape: f32[1,128], index: 1, kind: output, shape index: {0}]   ;;  %s177_s2 = inlined_call_operand.hbm [shape: f32[1,1], index: 2, kind: output, shape index: {1}]  }
   0x1   :  { %9 = vsyncpa [#allocation4], 0 }
   0x2   :  { %10 = vsyncpa [#allocation5], 0  ;;  %s16_s11 = sshll.u32 %s175_s0, 4  ;;  %s148_s12 = smov [#allocation2]   ;;  %s17_s11 = int_to_ptr.hbm [resolvable:$true] %s16_s11 }
   0x3   :  { %s18_s13 = sshll.u32 %s148_s12, 4  ;;  %s19_s13 = int_to_ptr.vmem [resolvable:$true] %s18_s13 }
   0x4   :  { %21 = dma.hbm_to_vmem [thread:$0]  %s17_s11, 64, %s19_s13, [#allocation3]  }
   0x5   :  { %142 = dma.done.wait [#allocation3], 64  }
   0x6   :  { %143 = vsyncadd [#allocation3], 4294967232  ;;  %v26_v0 = vld [vmem:[#allocation2] sm:$0x1]  ;;  %v27_v1 = vld [vmem:[#allocation2 + $0x1] sm:$0x1] }
   0x7   :  { %v28_v2 = vld [vmem:[#allocation2 + $0x2] sm:$0x1]  ;;  %vm32_vm0 = vcmask 1040384   ;;  %s149_s14 = smov [#allocation6]   ;;  %s52_s17 = sshll.u32 %s176_s1, 4  ;;  %s53_s17 = int_to_ptr.hbm [resolvable:$true] %s52_s17 }
   0x8   :  { %v29_v3 = vmul.f32 %v28_v2, %v27_v1  ;;  %s50_s15 = sshll.u32 %s149_s14, 4  ;;  %s61_s20 = sshll.u32 %s177_s2, 4  ;;  %s51_s15 = int_to_ptr.vmem [resolvable:$true] %s50_s15  ;;  %s62_s20 = int_to_ptr.hbm [resolvable:$true] %s61_s20 }
   0x9   :  { %s150_s22 = smov [#allocation7]  }
   0xa   :  { %v31_v4 = vmul.f32 %v29_v3, %v26_v0  ;;  %30 = vst [vmem:[#allocation6] sm:$0x1] %v29_v3 }
   0xb   :  { %55 = dma.vmem_to_hbm [thread:$0]  %s51_s15, 16, %s53_s17, [#allocation4]  }
   0xc   :  { %v33_v5 = vsel %vm32_vm0, %v31_v4, 0.0 }
   0xd   :  { %34 = vadd.xlane.f32.xlu0 %v33_v5 }
  0x80   :  { %v35_v6 = vpop.xlane.xlu0 %34 }
  0x81   :  { %v36_v7 = vrot.slane %v35_v6, 4 }
  0x83   :  { %v37_v8 = vadd.f32 %v36_v7, %v35_v6 }
  0x85   :  { %v38_v9 = vrot.slane %v37_v8, 2 }
  0x87   :  { %v39_v10 = vadd.f32 %v38_v9, %v37_v8 }
  0x89   :  { %v40_v11 = vrot.slane %v39_v10, 1 }
  0x8b   :  { %v41_v12 = vadd.f32 %v40_v11, %v39_v10 }
  0x8d   :  { %77 = vpush %v41_v12 }
  0xbe   :  { %s78_s21 = spop %77 }
  0xbf   :  { %44 = sst [smem:[#allocation7]] %s78_s21 }
  0xc0   :  { %64 = dma.smem_to_hbm %s150_s22, 16, %s62_s20, [#allocation5]  }
  0xc1   :  { %144 = dma.done.wait [#allocation4], 16  }
  0xc2   :  { %145 = vsyncadd [#allocation4], 4294967280 }
  0xc3   :  { %146 = dma.done.wait [#allocation5], 16  }
  0xc4   :  { %147 = vsyncadd [#allocation5], 4294967280 }
  0xc5   :  { %73 = sfence }
  0xc6   :  { %74 = vsyncpa [#allocation3], 1 }
  0xc7   :  { %75 = vsyncpa [#allocation4], 1 }
  0xc8   :  { %76 = vsyncpa [#allocation5], 1 }

</bundles_post_ra>
